<compile_context>
chip_gen: v5e
topology: v5e:2x2
jax: 0.10.0
libtpu: 0.0.40
codegen_flags: <defaults>
</compile_context>

<pallas_src>
import jax
import jax.numpy as jnp
from jax.experimental import pallas as pl
from jax.experimental.pallas import tpu as pltpu


def _glu_kernel(x_ref, o_ref):
    # x_ref: (2, TR, LAST) VMEM block; x_ref[0] = "a" half, x_ref[1] = "b" half.
    a = x_ref[0]
    b = x_ref[1]
    # sigmoid(b) == 0.5 * tanh(0.5 * b) + 0.5 : one EUP transcendental, no
    # VALU divide.  Multiply/adds run on the VPU; HBM bandwidth is the limit.
    o_ref[...] = a * (jnp.tanh(b * 0.5) * 0.5 + 0.5)


_TARGET_BLOCK_BYTES = 6 * 1024 * 1024  # ~6 MiB per input block (both halves)


def _choose_layout(half_elems: int, itemsize: int,
                   target_bytes: int = _TARGET_BLOCK_BYTES):
    """Lane-dense (ROWS, LAST) factorization of one channel half plus a
    sublane-aligned row tile TR sized so one input block is ~target_bytes.

    Returns None when half_elems is not a multiple of 128 (ragged); the
    caller then falls back to plain XLA instead of a degenerate (rows=1)
    layout that would waste 7/8 of every vreg.
    """
    if half_elems % 128 != 0:
        return None

    # Prefer a wide lane-dense LAST, but never at the cost of dropping ROWS
    # below 8 (sublane density + a real row grid for DMA/compute overlap).
    last = None
    for cand in (512, 384, 256, 128):
        if half_elems % cand == 0 and half_elems // cand >= 8:
            last = cand
            break
    if last is None:
        # Tiny tensor: ROWS < 8 no matter what; maximize ROWS with the
        # narrowest lane-dense LAST.
        for cand in (128, 256, 384, 512):
            if half_elems % cand == 0:
                last = cand
                break
    rows = half_elems // last

    # Row tile: one input block = 2 halves * TR * LAST * itemsize bytes.
    tr = target_bytes // (2 * last * itemsize)
    tr = max(8, (tr // 8) * 8)          # keep TR a multiple of 8 (sublanes)
    tr = min(tr, rows)                  # full dim is always a legal block
    return rows, last, tr


def glu(x: jax.Array) -> jax.Array:
    """GLU over channel axis 1 of an NCHW tensor, computed with a Pallas kernel."""
    n, c, h, w = x.shape
    assert c % 2 == 0, "channels dont divide 2!"
    nc = c // 2
    half = nc * h * w                   # elements in one channel half / example

    layout = _choose_layout(half, x.dtype.itemsize)
    if layout is None:
        # TODO(synk): ragged channel-half sizes (not a multiple of 128) go
        # through plain XLA; any Pallas layout for them wastes 7/8 of a vreg.
        return x[:, :nc] * jax.nn.sigmoid(x[:, nc:])

    rows, last, tr = layout

    # Free contiguous views: x4[n, 0] == x[n, :nc], x4[n, 1] == x[n, nc:].
    x4 = x.reshape(n, 2, rows, last)

    grid = (n, pl.cdiv(rows, tr))

    in_block_bytes = 2 * tr * last * x.dtype.itemsize
    out_block_bytes = tr * last * x.dtype.itemsize
    # Explicit VMEM budget: double-buffered in + out blocks plus headroom,
    # clamped to [32 MiB, 48 MiB] -- always below physical VMEM on every
    # generation (64 MiB on v7x, 128 MiB on v5e/v6e).
    vmem_limit = min(
        max(2 * (in_block_bytes + out_block_bytes) + (8 << 20), 32 << 20),
        48 << 20,
    )

    out3d = pl.pallas_call(
        _glu_kernel,
        out_shape=jax.ShapeDtypeStruct((n, rows, last), x.dtype),
        grid=grid,
        in_specs=[
            # Leading batch dim squeezed; both halves + a row tile per block.
            pl.BlockSpec((None, 2, tr, last), lambda i, j: (i, 0, j, 0)),
        ],
        out_specs=pl.BlockSpec((None, tr, last), lambda i, j: (i, j, 0)),
        compiler_params=pltpu.CompilerParams(
            dimension_semantics=("parallel", "parallel"),
            vmem_limit_bytes=vmem_limit,
        ),
    )(x4)

    return out3d.reshape(n, nc, h, w)


if __name__ == "__main__":
    key = jax.random.PRNGKey(0)
    # NCHW input, channels must be even.
    x = jax.random.normal(key, (2, 4, 16, 16), dtype=jnp.float32)

    out = glu(x)
    out = jax.block_until_ready(out)

    # Reference check in plain JAX (same semantics as the PyTorch module).
    nc = x.shape[1] // 2
    ref = x[:, :nc] * jax.nn.sigmoid(x[:, nc:])
    assert out.shape == (2, 2, 16, 16)
    assert jnp.allclose(out, ref, atol=1e-5, rtol=1e-5)

    print("KERNEL_OK")
</pallas_src>

<mosaic_0001>
module attributes {stable_mosaic.version = 11 : i64} {
  func.func @_glu_kernel(%arg0: i32, %arg1: i32, %arg2: memref<1x2x4x128xf32, #tpu.memory_space<vmem>>, %arg3: memref<1x4x128xf32, #tpu.memory_space<vmem>>) attributes {dimension_semantics = [#tpu.dimension_semantics<parallel>, #tpu.dimension_semantics<parallel>], iteration_bounds = array<i64: 2, 1>, scalar_prefetch = 0 : i64, scratch_operands = 0 : i64, tpu.core_type = #tpu.core_type<tc>, window_params = [{transform_indices = @transform_0, window_bounds = array<i64: 1, 2, 4, 128>}, {transform_indices = @transform_1, window_bounds = array<i64: 1, 4, 128>}]} {
    %c0 = arith.constant 0 : index
    %c0_0 = arith.constant 0 : index
    %c0_1 = arith.constant 0 : index
    %c0_2 = arith.constant 0 : index
    %0 = vector.load %arg2[%c0, %c0_0, %c0_1, %c0_2] : memref<1x2x4x128xf32, #tpu.memory_space<vmem>>, vector<1x1x4x128xf32>
    %1 = vector.shape_cast %0 : vector<1x1x4x128xf32> to vector<4x128xf32>
    %c0_3 = arith.constant 0 : index
    %c1 = arith.constant 1 : index
    %c0_4 = arith.constant 0 : index
    %c0_5 = arith.constant 0 : index
    %2 = vector.load %arg2[%c0_3, %c1, %c0_4, %c0_5] : memref<1x2x4x128xf32, #tpu.memory_space<vmem>>, vector<1x1x4x128xf32>
    %3 = vector.shape_cast %2 : vector<1x1x4x128xf32> to vector<4x128xf32>
    %cst = arith.constant 5.000000e-01 : f32
    %4 = vector.broadcast %cst : f32 to vector<4x128xf32>
    %5 = arith.mulf %3, %4 : vector<4x128xf32>
    %6 = math.tanh %5 : vector<4x128xf32>
    %cst_6 = arith.constant 5.000000e-01 : f32
    %7 = vector.broadcast %cst_6 : f32 to vector<4x128xf32>
    %8 = arith.mulf %6, %7 : vector<4x128xf32>
    %cst_7 = arith.constant 5.000000e-01 : f32
    %9 = vector.broadcast %cst_7 : f32 to vector<4x128xf32>
    %10 = arith.addf %8, %9 : vector<4x128xf32>
    %11 = arith.mulf %1, %10 : vector<4x128xf32>
    %c0_8 = arith.constant 0 : index
    %c0_9 = arith.constant 0 : index
    %c0_10 = arith.constant 0 : index
    %12 = vector.load %arg3[%c0_8, %c0_9, %c0_10] : memref<1x4x128xf32, #tpu.memory_space<vmem>>, vector<1x4x128xf32>
    %13 = vector.shape_cast %12 : vector<1x4x128xf32> to vector<4x128xf32>
    %14 = vector.shape_cast %11 : vector<4x128xf32> to vector<1x4x128xf32>
    tpu.vector_store %arg3[%c0_8, %c0_9, %c0_10], %14 {strides = array<i32>} : memref<1x4x128xf32, #tpu.memory_space<vmem>>, vector<1x4x128xf32>,
    return
  }
  func.func @transform_0(%arg0: i32, %arg1: i32) -> (i32, i32, i32, i32) {
    %c0_i32 = arith.constant 0 : i32
    %c0_i32_0 = arith.constant 0 : i32
    %c0_i32_1 = arith.constant 0 : i32
    return %arg0, %c0_i32, %arg1, %c0_i32_0 : i32, i32, i32, i32
  }
  func.func @transform_1(%arg0: i32, %arg1: i32) -> (i32, i32, i32) {
    %c0_i32 = arith.constant 0 : i32
    %c0_i32_0 = arith.constant 0 : i32
    return %arg0, %arg1, %c0_i32 : i32, i32, i32
  }
}

</mosaic_0001>

<bundles_post_ra>
// kernel: tpu_custom_call.1
= control target key start
LH: loop header
LB: loop body
LE: loop exit
PB: predicated region body
PF: predicated region fallthrough
CT: control target
= control target key end

     0   :  { %6 = vsyncpa [#allocation3], 0  ;;  %s590_s0 = inlined_call_operand.hbm [shape: f32[2,2,4,128], index: 0, kind: input, shape index: {}]   ;;  %s591_s1 = inlined_call_operand.hbm [shape: f32[2,4,128], index: 1, kind: output, shape index: {}]  }
   0x1   :  { %8 = vsyncpa [#allocation3 + $0x1], 0 }
   0x2   :  { %9 = vsyncpa [#allocation4], 0 }
   0x3   :  { %11 = vsyncpa [#allocation4 + $0x1], 0  ;;  %s469_s6 = smov 0   ;;  %s471_s7 = smov 0  }
   0x4   :  { %s473_s8 = smov 0   ;;  %s475_s9 = smov 0  }
   0x5   :  { %s477_s10 = smov 0   ;;  %s479_s11 = smov 0  }
   0x6 LB: > { %s261_s12 = sadd.s32 4294967295, %s455_s11   ;;  %s262_s13 = sadd.s32 4294967294, %s455_s11   ;;  %s455_s11 = sphi %s479_s11, %s17_s11   ;;  %s451_s10 = sphi %s477_s10, %s600_s10   ;;  %s447_s9 = sphi %s475_s9, %s599_s9   ;;  %s443_s8 = sphi %s473_s8, %s598_s8   ;;  %s439_s7 = sphi %s471_s7, %s597_s7   ;;  %s435_s6 = sphi %s469_s6, %s596_s6  }
   0x7   : > { %s29_s14 = sadd.s32 1, %s451_s10  ;;  %s38_s15 = sadd.s32 1, %s443_s8 }
   0x8   : > { %p31_p0 = scmp.ge.s32.totalorder %s29_s14, 2  ;;  %p45_p1 = scmp.ne.s32.totalorder %s443_s8, %s439_s7 }
   0x9   : > { %p46_p2 = scmp.eq.s32.totalorder %s455_s11, 0  ;;  %p51_p3 = scmp.ne.s32.totalorder %s439_s7, %s435_s6 }
   0xa   : > { %s602_s14 = smov (%p31_p0, %s29_s14), 0  ;;  %p52_p5 = scmp.eq.s32.totalorder %s261_s12, 0 }
   0xb   : > { %p510_p4 = por %p46_p2, %p45_p1  ;;  %s33_s17 = ssub.s32 %s451_s10, %s602_s14 }
   0xc   : > { %p77_p6 = scmp.eq.s32.totalorder %s261_s12, 1  ;;  %p36_p7 = scmp.eq.s32.totalorder %s33_s17, 0 }
   0xd   : > { %p516_p8 = por %p52_p5, %p51_p3  ;;  %p83_p10 = scmp.eq.s32.totalorder %s262_s13, 1 }
   0xe   : > { %p520_p9 = por %p77_p6, %p45_p1  ;;  %p264_p12 = scmp.ge.s32.totalorder %s455_s11, 2 }
   0xf   : > { %s525_s20 = scalar_select %p36_p7, %s443_s8, %s38_s15  }
  0x10   : > { %p527_p11 = por %p83_p10, %p51_p3  ;;  %p289_p13 = scmp.lt.s32.totalorder %s455_s11, 2 }
  0x11   : > { %s103_s22 = sand.u32 1, %s443_s8   ;;  %s276_s24 = sshll.u32 %s451_s10, 3 }
  0x12   : > { %s265_s23 = sshll.u32 %s103_s22, 3  ;;  %s113_s27 = scalar_lea.hbm %s590_s0, %s276_s24 }
  0x13   : > { %s107_s28 = scalar_lea.vmem [#allocation2], %s265_s23  ;;  %s114_s30 = sshll.u32 %s113_s27, 4  ;;  %s115_s30 = int_to_ptr.hbm [resolvable:$true] %s114_s30 }
  0x14   : > { %s116_s29 = sshll.u32 %s107_s28, 4  ;;  %p282_p0 = pnand %p289_p13, %p510_p4  ;;  %s117_s29 = int_to_ptr.vmem [resolvable:$true] %s116_s29 }
  0x15   : > { %p268_p1 = scmp.ge.s32.totalorder %s455_s11, 1  ;;  %s104_s2 = scalar_lea.sflag [#allocation3], %s103_s22 }
  0x16   : > { %s457_s3 = smov 64   ;;  %s458_s4 = smov 4  }
  0x17   : > { %284 = dma.hbm_to_vmem [thread:$0]  (!%p282_p0), %s115_s30, 128, %s117_s29, %s104_s2, %s457_s3, %s457_s3, %s458_s4  }
  0x18   : > { %p124_p2 = scmp.lt.s32.totalorder %s455_s11, 3 }
  0x1a   : > { %p125_p3 = pnand %p268_p1, %p124_p2 }
  0x1b   : > { %s543_s5 = sand.u32 (!%p125_p3), 1, %s439_s7  }
  0x1c   : > { %128 = sbr.rel (%p125_p3) target bundleno = 53 (0x35), region = 24  ;;  %s269_s12 = sshll.u32 (!%p125_p3), %s543_s5, 3 }
  0x1d   : > { %s131_s13 = scalar_lea.sflag (!%p125_p3), [#allocation3], %s543_s5  ;;  %s134_s15 = scalar_lea.vmem (!%p125_p3), [#allocation2], %s269_s12 }
  0x21   : > { %426 = dma.done.wait (%p516_p8), %s131_s13, 128  }
  0x22   : > { %428 = vsyncadd (%p516_p8), %s131_s13, 4294967168  ;;  %v271_v0 = vld [vmem:[%s134_s15 + $0x4] sm:$0xf]  ;;  %s270_s16 = sshll.u32 %s543_s5, 2  ;;  %s273_s17 = sshll.u32 %s447_s9, 2 }
  0x23   : > { %v157_v1 = vmul.f32 0.5, %v271_v0  ;;  %s175_s24 = scalar_lea.hbm %s591_s1, %s273_s17  ;;  %v154_v4 = vld [vmem:[%s134_s15] sm:$0xf]  ;;  %s153_s25 = scalar_lea.vmem [#allocation5], %s270_s16 }
  0x24   : > { %s177_s26 = sshll.u32 %s153_s25, 4  ;;  %s179_s18 = sshll.u32 %s175_s24, 4  ;;  %s178_s26 = int_to_ptr.vmem [resolvable:$true] %s177_s26  ;;  %s180_s18 = int_to_ptr.hbm [resolvable:$true] %s179_s18 }
  0x25   : > { %341 = vtanh.f32 %v157_v1  ;;  %s164_s27 = scalar_lea.sflag [#allocation4], %s543_s5  ;;  %s387_s28 = sshra.s32 %s180_s18, 4  ;;  %s388_s28 = int_to_ptr.hbm [resolvable:$true] %s387_s28 }
  0x26   : > { %s389_s9 = scalar_lea.hbm %s388_s28, 4  ;;  %s393_s2 = scalar_lea.hbm %s591_s1, 8 }
  0x27   : > { %p390_p4 = scmp.ne.s32.totalorder %s388_s28, %s389_s9  ;;  %p394_p7 = scmp.lt.s32.totalorder %s388_s28, %s591_s1 }
  0x28   : > { %p395_p8 = scmp.lt.s32.totalorder %s393_s2, %s389_s9 }
  0x29   : > { %p391_p5 = pnand %p390_p4, %p520_p9 }
  0x2a   : > { %p396_p10 = por %p395_p8, %p394_p7 }
  0x2b   : > { %v342_v2 = vpop.eup %341  ;;  %p392_p6 = pneg %p391_p5 }
  0x2c   : > { %v159_v3 = vmul.f32 0.5, %v342_v2 }
  0x2d   : > { %p397_p13 = pnand %p396_p10, %p392_p6 }
  0x2e   : > { %v160_v5 = vadd.f32 0.5, %v159_v3 }
  0x30   : > { %v161_v6 = vmul.f32 %v160_v5, %v154_v4 }
  0x32   : > { %162 = vst [vmem:[%s153_s25] sm:$0xf] %v161_v6 }
  0x33   : > { %400 = shalt.err (!%p397_p13)
}
  0x34   : > { %279 = dma.vmem_to_hbm [thread:$0]  (%p520_p9), %s178_s26, 64, %s180_s18, %s164_s27  }
  0x35 PF: > { %s191_s5 = sand.u32 1, %s435_s6   ;;  %p286_p0 = pnand %p264_p12, %p527_p11 }
  0x36   : > { %s192_s12 = scalar_lea.sflag [#allocation4], %s191_s5 }
  0x37   : > { %p287_p1 = pneg %p286_p0 }
  0x39   : > { %430 = dma.done.wait (%p287_p1), %s192_s12, 64  }
  0x3a   : > { %432 = vsyncadd (%p287_p1), %s192_s12, 4294967232  ;;  %s17_s11 = sadd.s32 1, %s455_s11   ;;  %s596_s6 = smov %s439_s7 }
  0x3b   : > { %p14_p2 = scmp.ge.s32.totalorder %s17_s11, 4   ;;  %s597_s7 = smov %s443_s8 }
  0x3c   : > { %s598_s8 = smov %s525_s20  ;;  %s599_s9 = smov %s451_s10 }
  0x3d   : > { %s600_s10 = smov %s602_s14  ;;  %16 = sbr.rel (!%p14_p2) target bundleno = 6 (0x6), region = 70 }
  0x42   :  { %198 = vsyncpa [#allocation3], 1 }
  0x43   :  { %200 = vsyncpa [#allocation3 + $0x1], 1 }
  0x44   :  { %201 = vsyncpa [#allocation4], 1 }
  0x45   :  { %203 = vsyncpa [#allocation4 + $0x1], 1 }

</bundles_post_ra>
